<compile_context>
chip_gen: v6e
topology: v6e:2x2x1
jax: 0.10.0
libtpu: 0.0.40
codegen_flags: <defaults>
</compile_context>

<pallas_src>
import math

import jax
import jax.numpy as jnp
from jax.experimental import pallas as pl
from jax.experimental.pallas import tpu as pltpu

# ---- model hyper-parameters (small, consistent with the module) ------------
B = 2           # batch
S = 8           # sequence length
D_MODEL = 32    # d_model
N_HEADS = 4     # num_heads
D_K = D_MODEL // N_HEADS
D_FF = 64       # feed-forward hidden
EPS = 1e-6
NEG_INF = -1.0e9        # padding mask value (matches torch masked_fill)
CROSS_NEG = -2.0e9      # cross-batch kill blocks (strictly below padding -> always exp-underflow to 0)

N = B * S               # flattened (batch, seq) rows
R = N_HEADS * N         # replicated K/V rows == score columns (= H * B * S)


def _layer_norm(t):
    # PyTorch module: alpha * (x - mean) / (std_unbiased + eps) + bias, alpha=1, bias=0.
    # Unbiased std (N-1), eps added to std.  Divide goes to the EUP via approx reciprocal.
    mean = jnp.mean(t, axis=-1, keepdims=True)
    var = jnp.sum((t - mean) ** 2, axis=-1, keepdims=True) / (t.shape[-1] - 1)
    inv = pl.reciprocal(jnp.sqrt(var) + EPS, approx=True)
    return (t - mean) * inv


def encoder_block_kernel(
    x_ref, mask_ref, head_mask_ref, blk_ref,
    wqkv_ref, bqkv_ref, wo_ref, bo_ref,
    w1_ref, b1_ref, w2_ref, b2_ref,
    out_ref, attn_ref,
):
    x2 = x_ref[...]                                   # (N, D)

    # ---- residual connection 0: x + SelfAttention(LN(x)) -------------------
    y = _layer_norm(x2)

    # fused Q/K/V projection: one MXU push, three static lane-range slices.
    qkv = jnp.dot(y, wqkv_ref[...], preferred_element_type=jnp.float32) + bqkv_ref[...]
    q = qkv[:, :D_MODEL]                              # already scaled by 1/sqrt(d_k)
    k = qkv[:, D_MODEL:2 * D_MODEL]
    v = qkv[:, 2 * D_MODEL:]

    # Block-diagonal head expansion (host-provided 0/1 selector):
    #   k_big[h*N + n, d] = k[n, d] * [head(d) == h]
    head_mask = head_mask_ref[...]                    # (R, D)
    k_big = jnp.concatenate([k] * N_HEADS, axis=0) * head_mask       # (R, D)
    v_big = jnp.concatenate([v] * N_HEADS, axis=0) * head_mask       # (R, D)

    # scores[n, h*N + n'] = <q_h[n], k_h[n']> / sqrt(d_k)   — single 2-D matmul
    scores = jax.lax.dot_general(q, k_big, (((1,), (1,)), ((), ())),
                                 preferred_element_type=jnp.float32)  # (N, R)
    # additive mask: 0 keep / -1e9 padding / -2e9 cross-batch kill blocks
    scores = scores + mask_ref[...]

    # ---- per-(head, batch)-segment softmax, fully lane-dense ---------------
    # Per-row GLOBAL max shift is softmax-shift-invariant per segment; segment sums
    # are recovered with the 0/1 block selector matmul (broadcast back over columns).
    m = jnp.max(scores, axis=-1, keepdims=True)
    e = jnp.exp(scores - m)                                            # (N, R)
    denom = jnp.dot(e, blk_ref[...], preferred_element_type=jnp.float32)
    # cross-batch segments sum to exactly 0 -> guard before the approx reciprocal
    denom = jnp.maximum(denom, 1e-30)
    p = e * pl.reciprocal(denom, approx=True)                          # (N, R)

    attn_ref[...] = p                      # single lane-dense store; wrapper extracts (B,H,S,S)

    # ctx is already the head-concatenated output: ctx[n, :] = concat_h(p_h @ v_h)
    ctx = jnp.dot(p, v_big, preferred_element_type=jnp.float32)        # (N, D)
    attn_out = jnp.dot(ctx, wo_ref[...], preferred_element_type=jnp.float32) + bo_ref[...]
    x1 = x2 + attn_out

    # ---- residual connection 1: x1 + FFN(LN(x1)) ----------------------------
    y2 = _layer_norm(x1)
    h1 = jnp.dot(y2, w1_ref[...], preferred_element_type=jnp.float32) + b1_ref[...]
    h1 = jnp.maximum(h1, 0.0)                                           # ReLU
    ff = jnp.dot(h1, w2_ref[...], preferred_element_type=jnp.float32) + b2_ref[...]

    out_ref[...] = (x1 + ff).astype(out_ref.dtype)


def prepare_params(params):
    """One-time host-side parameter transform: pack QKV, fold 1/sqrt(d_k) into the
    q weight/bias, and build the constant selector matrices."""
    scale = 1.0 / math.sqrt(D_K)
    wqkv = jnp.concatenate([params["wq"] * scale, params["wk"], params["wv"]], axis=1)  # (D, 3D)
    bqkv = jnp.concatenate([params["bq"] * scale, params["bk"], params["bv"]], axis=1)  # (1, 3D)

    # head selector for replicated K/V rows: row r = h*N + n belongs to head h = r // N
    r_head = jnp.arange(R)[:, None] // N                  # (R, 1)
    d_head = jnp.arange(D_MODEL)[None, :] // D_K          # (1, D)
    head_mask = (r_head == d_head).astype(jnp.float32)    # (R, D)

    # per-(head, batch) softmax segment selector: contiguous S-blocks along the column axis
    seg = jnp.arange(R) // S
    blk = (seg[:, None] == seg[None, :]).astype(jnp.float32)  # (R, R)

    return {
        "wqkv": wqkv, "bqkv": bqkv,
        "wo": params["wo"], "bo": params["bo"],
        "w1": params["w1"], "b1": params["b1"],
        "w2": params["w2"], "b2": params["b2"],
        "head_mask": head_mask, "blk": blk,
    }


def encoder_block(x, src_mask, prep):
    """x: (B,S,D) f32; src_mask: (B,S,S) f32 (0 => masked); prep: prepare_params(...) output."""
    B_, S_, D_ = x.shape
    x2 = x.reshape(B_ * S_, D_)

    # additive mask (N, R): -1e9 where src_mask == 0, -2e9 on cross-batch blocks, 0 elsewhere.
    pad = jnp.where(src_mask == 0, NEG_INF, 0.0)                        # (B, S, S')
    same_b = jnp.arange(B_)[:, None] == jnp.arange(B_)[None, :]         # (B, B')
    mask5 = jnp.where(same_b[:, None, None, :, None],                   # (B,1,1,B',1)
                      pad[:, :, None, None, :],                         # (B,S,1,1,S')
                      CROSS_NEG)                                        # -> (B,S,1,B',S')
    mask5 = jnp.broadcast_to(mask5, (B_, S_, N_HEADS, B_, S_))
    mask_add = mask5.reshape(B_ * S_, N_HEADS * B_ * S_).astype(jnp.float32)   # (N, R)

    full = lambda shape: pl.BlockSpec(shape, lambda i: (0,) * len(shape))

    in_specs = [
        full((N, D_MODEL)),                                 # x (flattened)
        full((N, R)),                                       # additive mask
        full((R, D_MODEL)),                                 # head selector
        full((R, R)),                                       # softmax segment selector
        full((D_MODEL, 3 * D_MODEL)), full((1, 3 * D_MODEL)),   # wqkv, bqkv
        full((D_MODEL, D_MODEL)),     full((1, D_MODEL)),       # wo, bo
        full((D_MODEL, D_FF)),        full((1, D_FF)),          # w1, b1
        full((D_FF, D_MODEL)),        full((1, D_MODEL)),       # w2, b2
    ]
    out_specs = [
        full((N, D_MODEL)),                                 # x_out (flattened)
        full((N, R)),                                       # attention probs (lane-dense)
    ]
    out_shape = [
        jax.ShapeDtypeStruct((N, D_MODEL), jnp.float32),
        jax.ShapeDtypeStruct((N, R), jnp.float32),
    ]

    x_out2, p_full = pl.pallas_call(
        encoder_block_kernel,
        out_shape=out_shape,
        grid_spec=pltpu.PrefetchScalarGridSpec(
            num_scalar_prefetch=0,
            grid=(1,),                                      # whole batch fused in one step
            in_specs=in_specs,
            out_specs=out_specs,
        ),
        compiler_params=pltpu.CompilerParams(
            dimension_semantics=("arbitrary",)),
    )(
        x2, mask_add, prep["head_mask"], prep["blk"],
        prep["wqkv"], prep["bqkv"], prep["wo"], prep["bo"],
        prep["w1"], prep["b1"], prep["w2"], prep["b2"],
    )

    x_out = x_out2.reshape(B_, S_, D_)
    # layout plumbing back to the PyTorch (B, H, S, S) attention layout:
    # attn[b, h, s, t] = p_full[(b, s), (h, b, t)]  (cross-batch blocks are exactly 0)
    p5 = p_full.reshape(B_, S_, N_HEADS, B_, S_)
    attn = p5[jnp.arange(B_), :, :, jnp.arange(B_), :]      # (B, S, H, S)
    attn = attn.transpose(0, 2, 1, 3)                       # (B, H, S, S)
    return x_out, attn


def encoder_block_reference(x, src_mask, params):
    """Pure-JAX reference matching the PyTorch module (eval mode)."""
    def ln(t):
        mean = jnp.mean(t, axis=-1, keepdims=True)
        var = jnp.sum((t - mean) ** 2, axis=-1, keepdims=True) / (t.shape[-1] - 1)
        return (t - mean) / (jnp.sqrt(var) + EPS)

    B_, S_, _ = x.shape
    y = ln(x)
    q = y @ params["wq"] + params["bq"]
    k = y @ params["wk"] + params["bk"]
    v = y @ params["wv"] + params["bv"]
    split = lambda t: t.reshape(B_, S_, N_HEADS, D_K).transpose(0, 2, 1, 3)
    qh, kh, vh = split(q), split(k), split(v)
    scores = jnp.einsum('bhqd,bhkd->bhqk', qh, kh) / math.sqrt(D_K)
    scores = jnp.where(src_mask[:, None, :, :] == 0, NEG_INF, scores)
    p = jax.nn.softmax(scores, axis=-1)
    ctx = jnp.einsum('bhqk,bhkd->bhqd', p, vh)
    ctx = ctx.transpose(0, 2, 1, 3).reshape(B_, S_, D_MODEL)
    x1 = x + (ctx @ params["wo"] + params["bo"])
    y2 = ln(x1)
    ff = jnp.maximum(y2 @ params["w1"] + params["b1"], 0.0) @ params["w2"] + params["b2"]
    return x1 + ff, p


def init_params(key):
    # Deterministic synthetic init.  Linear weights stored as (in, out),
    # i.e. already transposed relative to PyTorch's (out, in).
    ks = jax.random.split(key, 6)
    scale = 0.05
    return {
        "wq": scale * jax.random.normal(ks[0], (D_MODEL, D_MODEL), jnp.float32),
        "bq": jnp.zeros((1, D_MODEL), jnp.float32),
        "wk": scale * jax.random.normal(ks[1], (D_MODEL, D_MODEL), jnp.float32),
        "bk": jnp.zeros((1, D_MODEL), jnp.float32),
        "wv": scale * jax.random.normal(ks[2], (D_MODEL, D_MODEL), jnp.float32),
        "bv": jnp.zeros((1, D_MODEL), jnp.float32),
        "wo": scale * jax.random.normal(ks[3], (D_MODEL, D_MODEL), jnp.float32),
        "bo": jnp.zeros((1, D_MODEL), jnp.float32),
        "w1": scale * jax.random.normal(ks[4], (D_MODEL, D_FF), jnp.float32),
        "b1": 0.01 * jnp.ones((1, D_FF), jnp.float32),
        "w2": scale * jax.random.normal(ks[5], (D_FF, D_MODEL), jnp.float32),
        "b2": 0.01 * jnp.ones((1, D_MODEL), jnp.float32),
    }


if __name__ == "__main__":
    key = jax.random.PRNGKey(0)
    kx, kp = jax.random.split(key)

    x = jax.random.normal(kx, (B, S, D_MODEL), jnp.float32)
    # padding-style mask: last token of batch element 1 is masked out
    src_mask = jnp.ones((B, S, S), jnp.float32)
    src_mask = src_mask.at[1, :, -1].set(0.0)

    params = init_params(kp)
    prep = prepare_params(params)        # one-time host-side packing / scale folding

    x_out, attn_scores = encoder_block(x, src_mask, prep)
    jax.block_until_ready((x_out, attn_scores))

    assert x_out.shape == (B, S, D_MODEL)
    assert attn_scores.shape == (B, N_HEADS, S, S)
    assert bool(jnp.all(jnp.isfinite(x_out))) and bool(jnp.all(jnp.isfinite(attn_scores)))

    # sanity check against a pure-JAX reference (loose tol: approx reciprocals + MXU f32 passes)
    ref_out, ref_attn = encoder_block_reference(x, src_mask, params)
    assert bool(jnp.allclose(x_out, ref_out, atol=1e-2, rtol=1e-2)), "x_out mismatch vs reference"
    assert bool(jnp.allclose(attn_scores, ref_attn, atol=1e-2, rtol=1e-2)), "attention mismatch vs reference"

    print("KERNEL_OK")
</pallas_src>

<mosaic_0001>
module attributes {stable_mosaic.version = 11 : i64} {
  func.func @encoder_block_kernel(%arg0: i32, %arg1: memref<16x32xf32, #tpu.memory_space<vmem>>, %arg2: memref<16x64xf32, #tpu.memory_space<vmem>>, %arg3: memref<64x32xf32, #tpu.memory_space<vmem>>, %arg4: memref<64x64xf32, #tpu.memory_space<vmem>>, %arg5: memref<32x96xf32, #tpu.memory_space<vmem>>, %arg6: memref<1x96xf32, #tpu.memory_space<vmem>>, %arg7: memref<32x32xf32, #tpu.memory_space<vmem>>, %arg8: memref<1x32xf32, #tpu.memory_space<vmem>>, %arg9: memref<32x64xf32, #tpu.memory_space<vmem>>, %arg10: memref<1x64xf32, #tpu.memory_space<vmem>>, %arg11: memref<64x32xf32, #tpu.memory_space<vmem>>, %arg12: memref<1x32xf32, #tpu.memory_space<vmem>>, %arg13: memref<16x32xf32, #tpu.memory_space<vmem>>, %arg14: memref<16x64xf32, #tpu.memory_space<vmem>>) attributes {dimension_semantics = [#tpu.dimension_semantics<arbitrary>], iteration_bounds = array<i64: 1>, scalar_prefetch = 0 : i64, scratch_operands = 0 : i64, tpu.core_type = #tpu.core_type<tc>, window_params = [{pipeline_mode = #tpu.pipeline_mode<synchronous>, transform_indices = @transform_0, window_bounds = array<i64: 16, 32>}, {pipeline_mode = #tpu.pipeline_mode<synchronous>, transform_indices = @transform_1, window_bounds = array<i64: 16, 64>}, {pipeline_mode = #tpu.pipeline_mode<synchronous>, transform_indices = @transform_2, window_bounds = array<i64: 64, 32>}, {pipeline_mode = #tpu.pipeline_mode<synchronous>, transform_indices = @transform_3, window_bounds = array<i64: 64, 64>}, {pipeline_mode = #tpu.pipeline_mode<synchronous>, transform_indices = @transform_4, window_bounds = array<i64: 32, 96>}, {pipeline_mode = #tpu.pipeline_mode<synchronous>, transform_indices = @transform_5, window_bounds = array<i64: 1, 96>}, {pipeline_mode = #tpu.pipeline_mode<synchronous>, transform_indices = @transform_6, window_bounds = array<i64: 32, 32>}, {pipeline_mode = #tpu.pipeline_mode<synchronous>, transform_indices = @transform_7, window_bounds = array<i64: 1, 32>}, {pipeline_mode = #tpu.pipeline_mode<synchronous>, transform_indices = @transform_8, window_bounds = array<i64: 32, 64>}, {pipeline_mode = #tpu.pipeline_mode<synchronous>, transform_indices = @transform_9, window_bounds = array<i64: 1, 64>}, {pipeline_mode = #tpu.pipeline_mode<synchronous>, transform_indices = @transform_10, window_bounds = array<i64: 64, 32>}, {pipeline_mode = #tpu.pipeline_mode<synchronous>, transform_indices = @transform_11, window_bounds = array<i64: 1, 32>}, {pipeline_mode = #tpu.pipeline_mode<synchronous>, transform_indices = @transform_12, window_bounds = array<i64: 16, 32>}, {pipeline_mode = #tpu.pipeline_mode<synchronous>, transform_indices = @transform_13, window_bounds = array<i64: 16, 64>}]} {
    %c0 = arith.constant 0 : index
    %c0_0 = arith.constant 0 : index
    %0 = vector.load %arg1[%c0, %c0_0] : memref<16x32xf32, #tpu.memory_space<vmem>>, vector<16x32xf32>
    %cst = arith.constant dense<0.000000e+00> : vector<16xf32>
    %1 = vector.multi_reduction <add>, %0, %cst [1] : vector<16x32xf32> to vector<16xf32>
    %2 = vector.shape_cast %1 : vector<16xf32> to vector<16x1xf32>
    %cst_1 = arith.constant 3.200000e+01 : f32
    %3 = vector.broadcast %cst_1 : f32 to vector<16x1xf32>
    %4 = arith.divf %2, %3 : vector<16x1xf32>
    %5 = vector.broadcast %4 : vector<16x1xf32> to vector<16x32xf32>
    %6 = arith.subf %0, %5 : vector<16x32xf32>
    %7 = arith.mulf %6, %6 : vector<16x32xf32>
    %cst_2 = arith.constant dense<0.000000e+00> : vector<16xf32>
    %8 = vector.multi_reduction <add>, %7, %cst_2 [1] : vector<16x32xf32> to vector<16xf32>
    %9 = vector.shape_cast %8 : vector<16xf32> to vector<16x1xf32>
    %cst_3 = arith.constant 3.100000e+01 : f32
    %10 = vector.broadcast %cst_3 : f32 to vector<16x1xf32>
    %11 = arith.divf %9, %10 : vector<16x1xf32>
    %12 = math.sqrt %11 : vector<16x1xf32>
    %cst_4 = arith.constant 9.99999997E-7 : f32
    %13 = vector.broadcast %cst_4 : f32 to vector<16x1xf32>
    %14 = arith.addf %12, %13 : vector<16x1xf32>
    %15 = tpu.reciprocal %14 {approx = true} : vector<16x1xf32> -> vector<16x1xf32>
    %16 = vector.broadcast %4 : vector<16x1xf32> to vector<16x32xf32>
    %17 = arith.subf %0, %16 : vector<16x32xf32>
    %18 = vector.broadcast %15 : vector<16x1xf32> to vector<16x32xf32>
    %19 = arith.mulf %17, %18 : vector<16x32xf32>
    %c0_5 = arith.constant 0 : index
    %c0_6 = arith.constant 0 : index
    %20 = vector.load %arg5[%c0_5, %c0_6] : memref<32x96xf32, #tpu.memory_space<vmem>>, vector<32x96xf32>
    %cst_7 = arith.constant dense<0.000000e+00> : vector<16x96xf32>
    %21 = tpu.matmul %19, %20, %cst_7 {dimension_numbers = #tpu.dot_dimension_numbers<[1], [0], [0], [1], [0, 0, 1, 1], [], []>} : vector<16x32xf32>, vector<32x96xf32>, vector<16x96xf32> -> vector<16x96xf32>
    %c0_8 = arith.constant 0 : index
    %c0_9 = arith.constant 0 : index
    %22 = vector.load %arg6[%c0_8, %c0_9] : memref<1x96xf32, #tpu.memory_space<vmem>>, vector<1x96xf32>
    %23 = vector.broadcast %22 : vector<1x96xf32> to vector<16x96xf32>
    %24 = arith.addf %21, %23 : vector<16x96xf32>
    %25 = vector.extract_strided_slice %24 {offsets = [0, 0], sizes = [16, 32], strides = [1, 1]} : vector<16x96xf32> to vector<16x32xf32>
    %26 = vector.extract_strided_slice %24 {offsets = [0, 32], sizes = [16, 32], strides = [1, 1]} : vector<16x96xf32> to vector<16x32xf32>
    %27 = vector.extract_strided_slice %24 {offsets = [0, 64], sizes = [16, 32], strides = [1, 1]} : vector<16x96xf32> to vector<16x32xf32>
    %c0_10 = arith.constant 0 : index
    %c0_11 = arith.constant 0 : index
    %28 = vector.load %arg3[%c0_10, %c0_11] : memref<64x32xf32, #tpu.memory_space<vmem>>, vector<64x32xf32>
    %29 = tpu.concatenate %26, %26, %26, %26 in 0 : vector<16x32xf32>, vector<16x32xf32>, vector<16x32xf32>, vector<16x32xf32> -> vector<64x32xf32>
    %30 = arith.mulf %29, %28 : vector<64x32xf32>
    %31 = tpu.concatenate %27, %27, %27, %27 in 0 : vector<16x32xf32>, vector<16x32xf32>, vector<16x32xf32>, vector<16x32xf32> -> vector<64x32xf32>
    %32 = arith.mulf %31, %28 : vector<64x32xf32>
    %cst_12 = arith.constant dense<0.000000e+00> : vector<16x64xf32>
    %33 = tpu.matmul %25, %30, %cst_12 {dimension_numbers = #tpu.dot_dimension_numbers<[1], [1], [0], [0], [0, 0, 1, 0], [], []>} : vector<16x32xf32>, vector<64x32xf32>, vector<16x64xf32> -> vector<16x64xf32>
    %c0_13 = arith.constant 0 : index
    %c0_14 = arith.constant 0 : index
    %34 = vector.load %arg2[%c0_13, %c0_14] : memref<16x64xf32, #tpu.memory_space<vmem>>, vector<16x64xf32>
    %35 = arith.addf %33, %34 : vector<16x64xf32>
    %cst_15 = arith.constant dense<0xFF800000> : vector<16xf32>
    %36 = vector.multi_reduction <maximumf>, %35, %cst_15 [1] : vector<16x64xf32> to vector<16xf32>
    %37 = vector.shape_cast %36 : vector<16xf32> to vector<16x1xf32>
    %38 = vector.broadcast %37 : vector<16x1xf32> to vector<16x64xf32>
    %39 = arith.subf %35, %38 : vector<16x64xf32>
    %40 = math.exp %39 : vector<16x64xf32>
    %c0_16 = arith.constant 0 : index
    %c0_17 = arith.constant 0 : index
    %41 = vector.load %arg4[%c0_16, %c0_17] : memref<64x64xf32, #tpu.memory_space<vmem>>, vector<64x64xf32>
    %cst_18 = arith.constant dense<0.000000e+00> : vector<16x64xf32>
    %42 = tpu.matmul %40, %41, %cst_18 {dimension_numbers = #tpu.dot_dimension_numbers<[1], [0], [0], [1], [0, 0, 1, 1], [], []>} : vector<16x64xf32>, vector<64x64xf32>, vector<16x64xf32> -> vector<16x64xf32>
    %cst_19 = arith.constant 1.000000e-30 : f32
    %43 = vector.broadcast %cst_19 : f32 to vector<16x64xf32>
    %44 = arith.maximumf %42, %43 : vector<16x64xf32>
    %45 = tpu.reciprocal %44 {approx = true} : vector<16x64xf32> -> vector<16x64xf32>
    %46 = arith.mulf %40, %45 : vector<16x64xf32>
    %c0_20 = arith.constant 0 : index
    %c0_21 = arith.constant 0 : index
    %47 = vector.load %arg14[%c0_20, %c0_21] : memref<16x64xf32, #tpu.memory_space<vmem>>, vector<16x64xf32>
    tpu.vector_store %arg14[%c0_20, %c0_21], %46 {strides = array<i32>} : memref<16x64xf32, #tpu.memory_space<vmem>>, vector<16x64xf32>,
    %cst_22 = arith.constant dense<0.000000e+00> : vector<16x32xf32>
    %48 = tpu.matmul %46, %32, %cst_22 {dimension_numbers = #tpu.dot_dimension_numbers<[1], [0], [0], [1], [0, 0, 1, 1], [], []>} : vector<16x64xf32>, vector<64x32xf32>, vector<16x32xf32> -> vector<16x32xf32>
    %c0_23 = arith.constant 0 : index
    %c0_24 = arith.constant 0 : index
    %49 = vector.load %arg7[%c0_23, %c0_24] : memref<32x32xf32, #tpu.memory_space<vmem>>, vector<32x32xf32>
    %cst_25 = arith.constant dense<0.000000e+00> : vector<16x32xf32>
    %50 = tpu.matmul %48, %49, %cst_25 {dimension_numbers = #tpu.dot_dimension_numbers<[1], [0], [0], [1], [0, 0, 1, 1], [], []>} : vector<16x32xf32>, vector<32x32xf32>, vector<16x32xf32> -> vector<16x32xf32>
    %c0_26 = arith.constant 0 : index
    %c0_27 = arith.constant 0 : index
    %51 = vector.load %arg8[%c0_26, %c0_27] : memref<1x32xf32, #tpu.memory_space<vmem>>, vector<1x32xf32>
    %52 = vector.broadcast %51 : vector<1x32xf32> to vector<16x32xf32>
    %53 = arith.addf %50, %52 : vector<16x32xf32>
    %54 = arith.addf %0, %53 : vector<16x32xf32>
    %cst_28 = arith.constant dense<0.000000e+00> : vector<16xf32>
    %55 = vector.multi_reduction <add>, %54, %cst_28 [1] : vector<16x32xf32> to vector<16xf32>
    %56 = vector.shape_cast %55 : vector<16xf32> to vector<16x1xf32>
    %cst_29 = arith.constant 3.200000e+01 : f32
    %57 = vector.broadcast %cst_29 : f32 to vector<16x1xf32>
    %58 = arith.divf %56, %57 : vector<16x1xf32>
    %59 = vector.broadcast %58 : vector<16x1xf32> to vector<16x32xf32>
    %60 = arith.subf %54, %59 : vector<16x32xf32>
    %61 = arith.mulf %60, %60 : vector<16x32xf32>
    %cst_30 = arith.constant dense<0.000000e+00> : vector<16xf32>
    %62 = vector.multi_reduction <add>, %61, %cst_30 [1] : vector<16x32xf32> to vector<16xf32>
    %63 = vector.shape_cast %62 : vector<16xf32> to vector<16x1xf32>
    %cst_31 = arith.constant 3.100000e+01 : f32
    %64 = vector.broadcast %cst_31 : f32 to vector<16x1xf32>
    %65 = arith.divf %63, %64 : vector<16x1xf32>
    %66 = math.sqrt %65 : vector<16x1xf32>
    %cst_32 = arith.constant 9.99999997E-7 : f32
    %67 = vector.broadcast %cst_32 : f32 to vector<16x1xf32>
    %68 = arith.addf %66, %67 : vector<16x1xf32>
    %69 = tpu.reciprocal %68 {approx = true} : vector<16x1xf32> -> vector<16x1xf32>
    %70 = vector.broadcast %58 : vector<16x1xf32> to vector<16x32xf32>
    %71 = arith.subf %54, %70 : vector<16x32xf32>
    %72 = vector.broadcast %69 : vector<16x1xf32> to vector<16x32xf32>
    %73 = arith.mulf %71, %72 : vector<16x32xf32>
    %c0_33 = arith.constant 0 : index
    %c0_34 = arith.constant 0 : index
    %74 = vector.load %arg9[%c0_33, %c0_34] : memref<32x64xf32, #tpu.memory_space<vmem>>, vector<32x64xf32>
    %cst_35 = arith.constant dense<0.000000e+00> : vector<16x64xf32>
    %75 = tpu.matmul %73, %74, %cst_35 {dimension_numbers = #tpu.dot_dimension_numbers<[1], [0], [0], [1], [0, 0, 1, 1], [], []>} : vector<16x32xf32>, vector<32x64xf32>, vector<16x64xf32> -> vector<16x64xf32>
    %c0_36 = arith.constant 0 : index
    %c0_37 = arith.constant 0 : index
    %76 = vector.load %arg10[%c0_36, %c0_37] : memref<1x64xf32, #tpu.memory_space<vmem>>, vector<1x64xf32>
    %77 = vector.broadcast %76 : vector<1x64xf32> to vector<16x64xf32>
    %78 = arith.addf %75, %77 : vector<16x64xf32>
    %cst_38 = arith.constant 0.000000e+00 : f32
    %79 = vector.broadcast %cst_38 : f32 to vector<16x64xf32>
    %80 = arith.maximumf %78, %79 : vector<16x64xf32>
    %c0_39 = arith.constant 0 : index
    %c0_40 = arith.constant 0 : index
    %81 = vector.load %arg11[%c0_39, %c0_40] : memref<64x32xf32, #tpu.memory_space<vmem>>, vector<64x32xf32>
    %cst_41 = arith.constant dense<0.000000e+00> : vector<16x32xf32>
    %82 = tpu.matmul %80, %81, %cst_41 {dimension_numbers = #tpu.dot_dimension_numbers<[1], [0], [0], [1], [0, 0, 1, 1], [], []>} : vector<16x64xf32>, vector<64x32xf32>, vector<16x32xf32> -> vector<16x32xf32>
    %c0_42 = arith.constant 0 : index
    %c0_43 = arith.constant 0 : index
    %83 = vector.load %arg12[%c0_42, %c0_43] : memref<1x32xf32, #tpu.memory_space<vmem>>, vector<1x32xf32>
    %84 = vector.broadcast %83 : vector<1x32xf32> to vector<16x32xf32>
    %85 = arith.addf %82, %84 : vector<16x32xf32>
    %86 = arith.addf %54, %85 : vector<16x32xf32>
    %c0_44 = arith.constant 0 : index
    %c0_45 = arith.constant 0 : index
    %87 = vector.load %arg13[%c0_44, %c0_45] : memref<16x32xf32, #tpu.memory_space<vmem>>, vector<16x32xf32>
    tpu.vector_store %arg13[%c0_44, %c0_45], %86 {strides = array<i32>} : memref<16x32xf32, #tpu.memory_space<vmem>>, vector<16x32xf32>,
    return
  }
  func.func @transform_0(%arg0: i32) -> (i32, i32) {
    %c0_i32 = arith.constant 0 : i32
    %c0_i32_0 = arith.constant 0 : i32
    %c0_i32_1 = arith.constant 0 : i32
    return %c0_i32, %c0_i32_0 : i32, i32
  }
  func.func @transform_1(%arg0: i32) -> (i32, i32) {
    %c0_i32 = arith.constant 0 : i32
    %c0_i32_0 = arith.constant 0 : i32
    %c0_i32_1 = arith.constant 0 : i32
    return %c0_i32, %c0_i32_0 : i32, i32
  }
  func.func @transform_2(%arg0: i32) -> (i32, i32) {
    %c0_i32 = arith.constant 0 : i32
    %c0_i32_0 = arith.constant 0 : i32
    %c0_i32_1 = arith.constant 0 : i32
    return %c0_i32, %c0_i32_0 : i32, i32
  }
  func.func @transform_3(%arg0: i32) -> (i32, i32) {
    %c0_i32 = arith.constant 0 : i32
    %c0_i32_0 = arith.constant 0 : i32
    %c0_i32_1 = arith.constant 0 : i32
    return %c0_i32, %c0_i32_0 : i32, i32
  }
  func.func @transform_4(%arg0: i32) -> (i32, i32) {
    %c0_i32 = arith.constant 0 : i32
    %c0_i32_0 = arith.constant 0 : i32
    %c0_i32_1 = arith.constant 0 : i32
    return %c0_i32, %c0_i32_0 : i32, i32
  }
  func.func @transform_5(%arg0: i32) -> (i32, i32) {
    %c0_i32 = arith.constant 0 : i32
    %c0_i32_0 = arith.constant 0 : i32
    %c0_i32_1 = arith.constant 0 : i32
    return %c0_i32, %c0_i32_0 : i32, i32
  }
  func.func @transform_6(%arg0: i32) -> (i32, i32) {
    %c0_i32 = arith.constant 0 : i32
    %c0_i32_0 = arith.constant 0 : i32
    %c0_i32_1 = arith.constant 0 : i32
    return %c0_i32, %c0_i32_0 : i32, i32
  }
  func.func @transform_7(%arg0: i32) -> (i32, i32) {
    %c0_i32 = arith.constant 0 : i32
    %c0_i32_0 = arith.constant 0 : i32
    %c0_i32_1 = arith.constant 0 : i32
    return %c0_i32, %c0_i32_0 : i32, i32
  }
  func.func @transform_8(%arg0: i32) -> (i32, i32) {
    %c0_i32 = arith.constant 0 : i32
    %c0_i32_0 = arith.constant 0 : i32
    %c0_i32_1 = arith.constant 0 : i32
    return %c0_i32, %c0_i32_0 : i32, i32
  }
  func.func @transform_9(%arg0: i32) -> (i32, i32) {
    %c0_i32 = arith.constant 0 : i32
    %c0_i32_0 = arith.constant 0 : i32
    %c0_i32_1 = arith.constant 0 : i32
    return %c0_i32, %c0_i32_0 : i32, i32
  }
  func.func @transform_10(%arg0: i32) -> (i32, i32) {
    %c0_i32 = arith.constant 0 : i32
    %c0_i32_0 = arith.constant 0 : i32
    %c0_i32_1 = arith.constant 0 : i32
    return %c0_i32, %c0_i32_0 : i32, i32
  }
  func.func @transform_11(%arg0: i32) -> (i32, i32) {
    %c0_i32 = arith.constant 0 : i32
    %c0_i32_0 = arith.constant 0 : i32
    %c0_i32_1 = arith.constant 0 : i32
    return %c0_i32, %c0_i32_0 : i32, i32
  }
  func.func @transform_12(%arg0: i32) -> (i32, i32) {
    %c0_i32 = arith.constant 0 : i32
    %c0_i32_0 = arith.constant 0 : i32
    %c0_i32_1 = arith.constant 0 : i32
    return %c0_i32, %c0_i32_0 : i32, i32
  }
  func.func @transform_13(%arg0: i32) -> (i32, i32) {
    %c0_i32 = arith.constant 0 : i32
    %c0_i32_0 = arith.constant 0 : i32
    %c0_i32_1 = arith.constant 0 : i32
    return %c0_i32, %c0_i32_0 : i32, i32
  }
}

</mosaic_0001>

<bundles_post_ra>
// kernel: tpu_custom_call.1
= control target key start
LH: loop header
LB: loop body
LE: loop exit
PB: predicated region body
PF: predicated region fallthrough
CT: control target
= control target key end

     0   :  { %19 = vsyncpa [#allocation3], 0  ;;  %s1679_s0 = inlined_call_operand.hbm [shape: f32[16,32], index: 0, kind: input, shape index: {}]   ;;  %s1680_s1 = inlined_call_operand.hbm [shape: f32[16,64], index: 1, kind: input, shape index: {}]   ;;  %s1681_s2 = inlined_call_operand.vmem [shape: f32[64,32], index: 2, kind: input, shape index: {}]   ;;  %s1682_s3 = inlined_call_operand.vmem [shape: f32[64,64], index: 3, kind: input, shape index: {}]   ;;  %s1683_s4 = inlined_call_operand.vmem [shape: f32[32,96], index: 4, kind: input, shape index: {}]   ;;  %s1684_s5 = inlined_call_operand.vmem [shape: f32[1,96], index: 5, kind: input, shape index: {}]   ;;  %s1685_s6 = inlined_call_operand.vmem [shape: f32[32,32], index: 6, kind: input, shape index: {}]   ;;  %s1686_s7 = inlined_call_operand.vmem [shape: f32[1,32], index: 7, kind: input, shape index: {}]   ;;  %s1687_s8 = inlined_call_operand.vmem [shape: f32[32,64], index: 8, kind: input, shape index: {}]   ;;  %s1688_s9 = inlined_call_operand.vmem [shape: f32[1,64], index: 9, kind: input, shape index: {}]   ;;  %s1689_s10 = inlined_call_operand.vmem [shape: f32[64,32], index: 10, kind: input, shape index: {}]   ;;  %s1690_s11 = inlined_call_operand.vmem [shape: f32[1,32], index: 11, kind: input, shape index: {}]   ;;  %s1691_s12 = inlined_call_operand.hbm [shape: f32[16,32], index: 12, kind: output, shape index: {0}]   ;;  %s1692_s13 = inlined_call_operand.hbm [shape: f32[16,64], index: 13, kind: output, shape index: {1}]  }
   0x1   :  { %20 = vsyncpa [#allocation6], 0 }
   0x2   :  { %21 = vsyncpa [#allocation4], 0 }
   0x3   :  { %22 = vsyncpa [#allocation9], 0  ;;  %s1312_s25 = smov [#allocation2]  }
   0x4   :  { %s28_s26 = sshll.u32 %s1312_s25, 4  ;;  %s29_s26 = int_to_ptr.vmem [resolvable:$true] %s28_s26 }
   0x5   :  { %s1232_s27 = scalar_lea.vmem %s29_s26, 256  ;;  %p1237_p1 = scmp.lt.s32.totalorder %s29_s26, %s29_s26 }
   0x6   :  { %p1233_p0 = scmp.ne.s32.totalorder %s29_s26, %s1232_s27  ;;  %p1238_p2 = scmp.lt.s32.totalorder %s1232_s27, %s1232_s27 }
   0x8   :  { %p1239_p3 = por %p1238_p2, %p1237_p1 }
   0xa   :  { %p1240_p4 = pnand %p1239_p3, %p1233_p0 }
   0xc   :  { %1243 = shalt.err (!%p1240_p4)
}
   0xd   :  { %s1313_s28 = smov 128   ;;  %s1314_s29 = smov 8  }
   0xe   :  { %34 = dma.hbm_to_vmem [thread:$0]  %s1679_s0, 256, %s29_s26, [#allocation3], %s1313_s28, %s1313_s28, %s1314_s29  }
   0xf   :  { %s1315_s15 = smov [#allocation5]  }
  0x10   :  { %s40_s16 = sshll.u32 %s1315_s15, 4  ;;  %s41_s16 = int_to_ptr.vmem [resolvable:$true] %s40_s16 }
  0x11   :  { %s1252_s17 = scalar_lea.vmem %s41_s16, 256  ;;  %p1257_p6 = scmp.lt.s32.totalorder %s41_s16, %s41_s16 }
  0x12   :  { %p1253_p5 = scmp.ne.s32.totalorder %s41_s16, %s1252_s17  ;;  %p1258_p7 = scmp.lt.s32.totalorder %s1252_s17, %s1252_s17 }
  0x14   :  { %p1259_p8 = por %p1258_p7, %p1257_p6 }
  0x16   :  { %p1260_p9 = pnand %p1259_p8, %p1253_p5 }
  0x18   :  { %1263 = shalt.err (!%p1260_p9)
}
  0x19   :  { %46 = dma.hbm_to_vmem [thread:$0]  %s1680_s1, 256, %s41_s16, [#allocation6], %s1313_s28, %s1313_s28, %s1314_s29  }
  0x1a   :  { %1304 = dma.done.wait [#allocation3], 256  }
  0x1b   :  { %1305 = vsyncadd [#allocation3], 4294967040 }
  0x1c   :  { %1306 = dma.done.wait [#allocation6], 256  }
  0x1d   :  { %1307 = vsyncadd [#allocation6], 4294967040  ;;  %vm75_vm0 = vcmask 261120   ;;  %v1403_v0 = vld [vmem:[#allocation2] sm:$0xff]  ;;  %v1405_v1 = vld [vmem:[#allocation2 + $0x8] sm:$0xff]  ;;  %s1316_s15 = smov 32  }
  0x1e   :  { %v76_v2 = vsel %vm75_vm0, %v1403_v0, 0.0  ;;  %v79_v3 = vsel %vm75_vm0, %v1405_v1, 0.0  ;;  %v121_v14 = vld [vmem:[%s1683_s4 + $0x18] sm:$0xff]  ;;  %v120_v15 = vld [vmem:[%s1683_s4 + $0x10] sm:$0xff]  ;;  %v119_v16 = vld [vmem:[%s1683_s4 + $0x8] sm:$0xff]  ;;  %s1317_s26 = smov 96  }
  0x1f   :  { %77 = vadd.xlane.f32.xlu0 %v76_v2  ;;  %1082 = vmatprep.subr.mxu0 %v121_v14  ;;  %v118_v17 = vld [vmem:[%s1683_s4] sm:$0xff]  ;;  %v1438_v18 = vld [vmem:[%s1681_s2 + $0x30] sm:$0xff]  ;;  %v1443_v19 = vld [vmem:[%s1681_s2 + $0x38] sm:$0xff]  ;;  %vm413_vm5 = vcmask 523264   ;;  %s1319_s17 = smov [#allocation8]  }
  0x20   :  { %1083 = vmatpush3.msra.mxu0 %v121_v14  ;;  %v1450_v20 = vld [vmem:[%s1681_s2 + $0x28] sm:$0xff]  ;;  %v1455_v21 = vld [vmem:[%s1681_s2 + $0x18] sm:$0xff]  ;;  %v1462_v22 = vld [vmem:[%s1681_s2 + $0x20] sm:$0xff]  ;;  %s981_s4 = sshll.u32 %s1319_s17, 4  ;;  %s982_s4 = int_to_ptr.vmem [resolvable:$true] %s981_s4 }
  0x21   :  { %1084 = vmatprep.subr.mxu0 %v120_v15  ;;  %v1467_v23 = vld [vmem:[%s1681_s2 + $0x8] sm:$0xff]  ;;  %v1474_v24 = vld [vmem:[%s1681_s2 + $0x10] sm:$0xff]  ;;  %v1480_v25 = vld [vmem:[%s1681_s2] sm:$0xff]  ;;  %p1269_p11 = scmp.lt.s32.totalorder %s982_s4, %s982_s4 }
  0x22   :  { %1085 = vmatpush3.msra.mxu0 %v120_v15  ;;  %v998_v48 = vld [vmem:[%s1684_s5] ss:$0 sm:$0xff]  ;;  %v290_v15 = vld [vmem:[#allocation5] sm:$0xff] }
  0x23   :  { %80 = vadd.xlane.f32.xlu0 %v79_v3  ;;  %1086 = vmatprep.subr.mxu0 %v119_v16 }
  0x24   :  { %1087 = vmatpush3.msra.mxu0 %v119_v16 }
  0x25   :  { %1088 = vmatprep.subr.mxu0 %v118_v17 }
  0x26   :  { %1089 = vmatpush3.msra.mxu0 %v118_v17 }
  0x39   :  { %240 = vrot.lane.b32.xlu0 %v1443_v19, %s1316_s15 }
  0x3d   :  { %232 = vrot.lane.b32.xlu0 %v1455_v21, %s1316_s15 }
  0x41   :  { %228 = vrot.lane.b32.xlu0 %v1467_v23, %s1316_s15 }
  0xa8   :  { %v78_v4 = vpop.xlane.xlu0 %77 }
  0xa9   :  { %v83_v5 = vmul.f32 0.03125, %v78_v4 }
  0xab   :  { %v1412_v6 = vsub.f32 %v1403_v0, %v83_v5 }
  0xac   :  { %v81_v7 = vpop.xlane.xlu0 %80 }
  0xad   :  { %v84_v8 = vmul.f32 0.03125, %v81_v7  ;;  %v87_v9 = vmul.f32 %v1412_v6, %v1412_v6 }
  0xaf   :  { %v1417_v10 = vsub.f32 %v1405_v1, %v84_v8  ;;  %v89_v11 = vsel %vm75_vm0, %v87_v9, 0.0 }
  0xb0   :  { %90 = vadd.xlane.f32.xlu1 %v89_v11  ;;  %v241_v49 = vpop.permute.xlu0 %240 }
  0xb1   :  { %v88_v12 = vmul.f32 %v1417_v10, %v1417_v10 }
  0xb3   :  { %v92_v13 = vsel %vm75_vm0, %v88_v12, 0.0 }
  0xb4   :  { %93 = vadd.xlane.f32.xlu1 %v92_v13  ;;  %v233_v57 = vpop.permute.xlu0 %232  ;;  %v291_v13 = vld [vmem:[#allocation5 + $0x8] sm:$0xff] }
  0xb8   :  { %v229_v62 = vpop.permute.xlu0 %228 }
  0xc5   :  { %238 = vrot.lane.b32.xlu1 %v1438_v18, %s1316_s15 }
  0xc9   :  { %236 = vrot.lane.b32.xlu1 %v1450_v20, %s1316_s15 }
  0xcd   :  { %234 = vrot.lane.b32.xlu1 %v1462_v22, %s1316_s15 }
  0xd1   :  { %230 = vrot.lane.b32.xlu1 %v1474_v24, %s1316_s15 }
  0xd5   :  { %226 = vrot.lane.b32.xlu1 %v1480_v25, %s1316_s15  ;;  %s1318_s15 = smov 64  }
 0x139   :  { %v91_v26 = vpop.xlane.xlu1 %90 }
 0x13a   :  { %v96_v27 = vmul.f32 0.032258064, %v91_v26 }
 0x13c   :  { %1200 = vrsqrt.f32 %v96_v27  ;;  %vm100_vm1 = vcmp.eq.f32.partialorder %v96_v27, inf  ;;  %v103_v32 = vand.u32 2147483648, %v96_v27  ;;  %vm102_vm2 = vcmp.eq.f32.partialorder %v96_v27, 0.0 }
 0x13d   :  { %v94_v28 = vpop.xlane.xlu1 %93 }
 0x13e   :  { %v97_v29 = vmul.f32 0.032258064, %v94_v28 }
 0x140   :  { %1202 = vrsqrt.f32 %v97_v29  ;;  %vm107_vm3 = vcmp.eq.f32.partialorder %v97_v29, inf  ;;  %v110_v38 = vand.u32 2147483648, %v97_v29  ;;  %vm109_vm4 = vcmp.eq.f32.partialorder %v97_v29, 0.0 }
 0x141   :  { %v239_v46 = vpop.permute.xlu1 %238 }
 0x145   :  { %v237_v47 = vpop.permute.xlu1 %236 }
 0x149   :  { %v1201_v30 = vpop.eup %1200  ;;  %v235_v52 = vpop.permute.xlu1 %234 }
 0x14a   :  { %v99_v31 = vmul.f32 %v1201_v30, %v96_v27  ;;  %v432_v30 = vld [vmem:[%s1682_s3 + $0x30] sm:$0xff] }
 0x14c   :  { %v101_v33 = vsel %vm100_vm1, %v96_v27, %v99_v31  ;;  %v431_v31 = vld [vmem:[%s1682_s3 + $0x28] sm:$0xff] }
 0x14d   :  { %v1203_v34 = vpop.eup %1202  ;;  %v104_v35 = vsel %vm102_vm2, %v103_v32, %v101_v33  ;;  %v231_v59 = vpop.permute.xlu1 %230  ;;  %v430_v32 = vld [vmem:[%s1682_s3 + $0x20] sm:$0xff]  ;;  %v428_v33 = vld [vmem:[%s1682_s3 + $0x10] sm:$0xff] }
 0x14e   :  { %v106_v36 = vmul.f32 %v1203_v34, %v97_v29  ;;  %v112_v37 = vadd.f32 1e-06, %v104_v35 }
 0x150   :  { %v108_v39 = vsel %vm107_vm3, %v97_v29, %v106_v36  ;;  %1204 = vrcp.f32 %v112_v37  ;;  %v433_v29 = vld [vmem:[%s1682_s3 + $0x38] sm:$0xff] }
 0x151   :  { %v111_v40 = vsel %vm109_vm4, %v110_v38, %v108_v39  ;;  %v227_v2 = vpop.permute.xlu1 %226  ;;  %1112 = vmatprep.subr.mxu0 %v433_v29 }
 0x152   :  { %v113_v41 = vadd.f32 1e-06, %v111_v40 }
 0x154   :  { %1206 = vrcp.f32 %v113_v41 }
 0x15d   :  { %v1205_v42 = vpop.eup %1204 }
 0x15e   :  { %v116_v43 = vmul.f32 %v1205_v42, %v1412_v6 }
 0x160   :  { %1090 = vmatprep.mubr.msk.f32.mxu0 %vm75_vm0, %v116_v43 }
 0x161   :  { %v1207_v44 = vpop.eup %1206 }
 0x162   :  { %v117_v45 = vmul.f32 %v1207_v44, %v1417_v10 }
 0x164   :  { %1091 = vmatmul.mubr.msk.f32.vlgmr.msra.gmra.mxu0 %vm75_vm0, %v117_v45 }
 0x165   :  { %1113 = vmatpush3.msra.mxu0 %v433_v29 }
 0x166   :  { %1114 = vmatprep.subr.mxu0 %v432_v30 }
 0x167   :  { %1115 = vmatpush3.msra.mxu0 %v432_v30 }
 0x168   :  { %1116 = vmatprep.subr.mxu0 %v431_v31 }
 0x169   :  { %1117 = vmatpush3.msra.mxu0 %v431_v31 }
 0x16a   :  { %1118 = vmatprep.subr.mxu0 %v430_v32 }
 0x16b   :  { %1119 = vmatpush3.msra.mxu0 %v430_v32 }
 0x224   :  { %v1092_v50 = vpop.f32.mrf.mxu0 }
 0x225   :  { %v1490_v51 = vadd.f32 %v1092_v50, %v998_v48 }
 0x226   :  { %v201_v53 = vpop.f32.mrf.mxu0 }
 0x227   :  { %v1492_v54 = vadd.f32 %v998_v48, %v201_v53  ;;  %v257_v55 = vmul.f32 %v241_v49, %v1490_v51  ;;  %v255_v58 = vmul.f32 %v237_v47, %v1490_v51  ;;  %v253_v61 = vmul.f32 %v233_v57, %v1490_v51 }
 0x228   :  { %v251_v3 = vmul.f32 %v229_v62, %v1490_v51 }
 0x229   :  { %1109 = vmatprep.mubr.msk.f32.mxu1 %vm75_vm0, %v1492_v54  ;;  %314 = vrot.lane.b32.xlu0 %v257_v55, %s1317_s26  ;;  %v256_v56 = vmul.f32 %v239_v46, %v1492_v54  ;;  %v254_v60 = vmul.f32 %v235_v52, %v1492_v54  ;;  %v252_v63 = vmul.f32 %v231_v59, %v1492_v54  ;;  %v639_v55 = vld [vmem:[%s1685_s6 + $0x18] sm:$0xff] }
 0x22a   :  { %v250_v4 = vmul.f32 %v227_v2, %v1492_v54 }
 0x22b   :  { %312 = vrot.lane.b32.xlu1 %v256_v56, %s1317_s26 }
 0x22d   :  { %310 = vrot.lane.b32.xlu0 %v255_v58, %s1317_s26 }
 0x22f   :  { %308 = vrot.lane.b32.xlu1 %v254_v60, %s1317_s26 }
 0x231   :  { %306 = vrot.lane.b32.xlu0 %v253_v61, %s1317_s26 }
 0x233   :  { %304 = vrot.lane.b32.xlu1 %v252_v63, %s1317_s26 }
 0x235   :  { %302 = vrot.lane.b32.xlu0 %v251_v3, %s1317_s26 }
 0x237   :  { %300 = vrot.lane.b32.xlu1 %v250_v4, %s1317_s26 }
 0x29b   :  { %v315_v5 = vpop.permute.xlu0 %314 }
 0x29c   :  { %1093 = vmatprep.subr.msk.mxu1 %vm75_vm0, %v315_v5 }
 0x29d   :  { %v313_v6 = vpop.permute.xlu1 %312  ;;  %1094 = vmatpush3.xpose.msk.msra.mxu1 %vm75_vm0, %v315_v5 }
 0x29e   :  { %1095 = vmatprep.subr.msk.mxu1 %vm75_vm0, %v313_v6 }
 0x29f   :  { %v311_v7 = vpop.permute.xlu0 %310 }
 0x2a1   :  { %1096 = vmatpush3.xpose.msk.msra.mxu1 %vm75_vm0, %v313_v6  ;;  %v309_v8 = vpop.permute.xlu1 %308 }
 0x2a2   :  { %1097 = vmatprep.subr.msk.mxu1 %vm75_vm0, %v311_v7 }
 0x2a3   :  { %v307_v9 = vpop.permute.xlu0 %306 }
 0x2a5   :  { %1098 = vmatpush3.xpose.msk.msra.mxu1 %vm75_vm0, %v311_v7  ;;  %v305_v10 = vpop.permute.xlu1 %304 }
 0x2a6   :  { %1099 = vmatprep.subr.msk.mxu1 %vm75_vm0, %v309_v8 }
 0x2a7   :  { %v303_v11 = vpop.permute.xlu0 %302 }
 0x2a9   :  { %1100 = vmatpush3.xpose.msk.msra.mxu1 %vm75_vm0, %v309_v8  ;;  %v301_v12 = vpop.permute.xlu1 %300 }
 0x2aa   :  { %1101 = vmatprep.subr.msk.mxu1 %vm75_vm0, %v307_v9 }
 0x2ad   :  { %1102 = vmatpush3.xpose.msk.msra.mxu1 %vm75_vm0, %v307_v9  ;;  %v637_v9 = vld [vmem:[%s1685_s6 + $0x8] sm:$0xff] }
 0x2ae   :  { %1103 = vmatprep.subr.msk.mxu1 %vm75_vm0, %v305_v10 }
 0x2b1   :  { %1104 = vmatpush3.xpose.msk.msra.mxu1 %vm75_vm0, %v305_v10  ;;  %v636_v10 = vld [vmem:[%s1685_s6] sm:$0xff] }
 0x2b2   :  { %1105 = vmatprep.subr.msk.mxu1 %vm75_vm0, %v303_v11 }
 0x2b5   :  { %1106 = vmatpush3.xpose.msk.msra.mxu1 %vm75_vm0, %v303_v11 }
 0x2b6   :  { %1107 = vmatprep.subr.msk.mxu1 %vm75_vm0, %v301_v12 }
 0x2b9   :  { %1108 = vmatpush3.xpose.msk.msra.mxu1 %vm75_vm0, %v301_v12 }
 0x2ba   :  { %1150 = vmatprep.subr.mxu1 %v639_v55 }
 0x2bc   :  { %1110 = vmatmul.mubr.msk.f32.vlgmr.msra.gmra.mxu1 %vm75_vm0, %v1490_v51 }
 0x2bd   :  { %1151 = vmatpush3.msra.mxu1 %v639_v55 }
 0x37c   :  { %v1111_v14 = vpop.f32.mrf.mxu1 }
 0x37d   :  { %v410_v16 = vadd.f32 %v1111_v14, %v291_v13  ;;  %v1015_v13 = vld [vmem:[%s1686_s7] ss:$0 sm:$0xff] }
 0x37e   :  { %v404_v17 = vpop.f32.mrf.mxu1 }
 0x37f   :  { %v405_v26 = vadd.f32 %v404_v17, %v290_v15  ;;  %v417_v27 = vsel %vm413_vm5, %v410_v16, -inf }
 0x380   :  { %418 = vmax.xlane.f32.xlu1 %v417_v27 }
 0x381   :  { %v414_v28 = vsel %vm413_vm5, %v405_v26, -inf }
 0x382   :  { %415 = vmax.xlane.f32.xlu0 %v414_v28 }
 0x391   :  { %270 = vrot.lane.b32.xlu1 %v1438_v18, %s1318_s15  ;;  %v429_v18 = vld [vmem:[%s1682_s3 + $0x18] sm:$0xff] }
 0x392   :  { %1120 = vmatprep.subr.mxu0 %v429_v18 }
 0x393   :  { %1121 = vmatpush3.msra.mxu0 %v429_v18 }
 0x394   :  { %1122 = vmatprep.subr.mxu0 %v428_v33 }
 0x395   :  { %266 = vrot.lane.b32.xlu1 %v1462_v22, %s1318_s15  ;;  %v427_v22 = vld [vmem:[%s1682_s3 + $0x8] sm:$0xff]  ;;  %1123 = vmatpush3.msra.mxu0 %v428_v33 }
 0x396   :  { %1124 = vmatprep.subr.mxu0 %v427_v22 }
 0x397   :  { %1125 = vmatpush3.msra.mxu0 %v427_v22 }
 0x398   :  { %272 = vrot.lane.b32.xlu0 %v1443_v19, %s1318_s15  ;;  %v426_v19 = vld [vmem:[%s1682_s3] sm:$0xff] }
 0x399   :  { %262 = vrot.lane.b32.xlu1 %v1474_v24, %s1318_s15  ;;  %1126 = vmatprep.subr.mxu0 %v426_v19 }
 0x39a   :  { %1127 = vmatpush3.msra.mxu0 %v426_v19 }
 0x39c   :  { %268 = vrot.lane.b32.xlu0 %v1450_v20, %s1318_s15 }
 0x39d   :  { %258 = vrot.lane.b32.xlu1 %v1480_v25, %s1318_s15 }
 0x3a0   :  { %264 = vrot.lane.b32.xlu0 %v1455_v21, %s1318_s15 }
 0x3a4   :  { %260 = vrot.lane.b32.xlu0 %v1467_v23, %s1318_s15 }
 0x409   :  { %v419_v24 = vpop.xlane.xlu1 %418 }
 0x40a   :  { %v421_v34 = vsub.f32 %v410_v16, %v419_v24 }
 0x40b   :  { %v416_v20 = vpop.xlane.xlu0 %415 }
 0x40c   :  { %v420_v35 = vsub.f32 %v405_v26, %v416_v20  ;;  %v424_v36 = vmul.f32 1.442695, %v421_v34  ;;  %v773_v34 = vld [vmem:[%s1687_s8 + $0x18] sm:$0xff]  ;;  %v772_v20 = vld [vmem:[%s1687_s8 + $0x10] sm:$0xff] }
 0x40d   :  { %v271_v37 = vpop.permute.xlu1 %270 }
 0x40e   :  { %v422_v38 = vmul.f32 1.442695, %v420_v35  ;;  %v288_v39 = vmul.f32 %v271_v37, %v1492_v54  ;;  %v771_v35 = vld [vmem:[%s1687_s8 + $0x8] sm:$0xff]  ;;  %v871_v37 = vld [vmem:[%s1689_s10 + $0x38] sm:$0xff] }
 0x40f   :  { %v273_v40 = vpop.permute.xlu0 %272 }
 0x410   :  { %1208 = vpow2.f32 %v422_v38  ;;  %v289_v25 = vmul.f32 %v273_v40, %v1490_v51  ;;  %543 = vrot.lane.b32.xlu1 %v288_v39, %s1318_s15  ;;  %v870_v38 = vld [vmem:[%s1689_s10 + $0x30] sm:$0xff]  ;;  %v869_v39 = vld [vmem:[%s1689_s10 + $0x28] sm:$0xff]  ;;  %v868_v40 = vld [vmem:[%s1689_s10 + $0x20] sm:$0xff] }
 0x411   :  { %1210 = vpow2.f32 %v424_v36  ;;  %v267_v21 = vpop.permute.xlu1 %266  ;;  %v770_v36 = vld [vmem:[%s1687_s8] sm:$0xff] }
 0x412   :  { %v286_v41 = vmul.f32 %v267_v21, %v1492_v54  ;;  %545 = vrot.lane.b32.xlu0 %v289_v25, %s1318_s15 }
 0x413   :  { %v269_v23 = vpop.permute.xlu0 %268 }
 0x414   :  { %v287_v42 = vmul.f32 %v269_v23, %v1490_v51  ;;  %539 = vrot.lane.b32.xlu1 %v286_v41, %s1318_s15 }
 0x415   :  { %v263_v43 = vpop.permute.xlu1 %262 }
 0x416   :  { %v284_v44 = vmul.f32 %v263_v43, %v1492_v54  ;;  %541 = vrot.lane.b32.xlu0 %v287_v42, %s1318_s15 }
 0x417   :  { %v265_v45 = vpop.permute.xlu0 %264 }
 0x418   :  { %v285_v46 = vmul.f32 %v265_v45, %v1490_v51  ;;  %535 = vrot.lane.b32.xlu1 %v284_v44, %s1318_s15 }
 0x419   :  { %v259_v47 = vpop.permute.xlu1 %258 }
 0x41a   :  { %v282_v48 = vmul.f32 %v259_v47, %v1492_v54  ;;  %537 = vrot.lane.b32.xlu0 %v285_v46, %s1318_s15  ;;  %v638_v54 = vld [vmem:[%s1685_s6 + $0x10] sm:$0xff] }
 0x41b   :  { %v261_v49 = vpop.permute.xlu0 %260  ;;  %1152 = vmatprep.subr.mxu1 %v638_v54 }
 0x41c   :  { %v283_v50 = vmul.f32 %v261_v49, %v1490_v51  ;;  %531 = vrot.lane.b32.xlu1 %v282_v48, %s1318_s15  ;;  %1153 = vmatpush3.msra.mxu1 %v638_v54 }
 0x41d   :  { %v1209_v52 = vpop.eup %1208  ;;  %1154 = vmatprep.subr.mxu1 %v637_v9 }
 0x41e   :  { %v1211_v53 = vpop.eup %1210  ;;  %1128 = vmatprep.mubr.msk.f32.mxu0 %vm413_vm5, %v1209_v52  ;;  %533 = vrot.lane.b32.xlu0 %v283_v50, %s1318_s15 }
 0x41f   :  { %1129 = vmatmul.mubr.msk.f32.vlgmr.msra.gmra.mxu0 %vm413_vm5, %v1211_v53  ;;  %1155 = vmatpush3.msra.mxu1 %v637_v9 }
 0x420   :  { %1156 = vmatprep.subr.mxu1 %v636_v10 }
 0x421   :  { %1157 = vmatpush3.msra.mxu1 %v636_v10 }
 0x422   :  { %1172 = vmatprep.subr.mxu1 %v871_v37 }
 0x482   :  { %v544_v51 = vpop.permute.xlu1 %543 }
 0x484   :  { %v546_v56 = vpop.permute.xlu0 %545 }
 0x485   :  { %1131 = vmatprep.subr.mxu0 %v546_v56 }
 0x486   :  { %v540_v57 = vpop.permute.xlu1 %539  ;;  %1132 = vmatpush3.msra.mxu0 %v546_v56 }
 0x487   :  { %1133 = vmatprep.subr.mxu0 %v544_v51 }
 0x488   :  { %1134 = vmatpush3.msra.mxu0 %v544_v51  ;;  %v542_v58 = vpop.permute.xlu0 %541 }
 0x489   :  { %1135 = vmatprep.subr.mxu0 %v542_v58 }
 0x48a   :  { %1136 = vmatpush3.msra.mxu0 %v542_v58  ;;  %v536_v59 = vpop.permute.xlu1 %535  ;;  %v867_v58 = vld [vmem:[%s1689_s10 + $0x18] sm:$0xff] }
 0x48b   :  { %1137 = vmatprep.subr.mxu0 %v540_v57 }
 0x48c   :  { %1138 = vmatpush3.msra.mxu0 %v540_v57  ;;  %v538_v60 = vpop.permute.xlu0 %537 }
 0x48d   :  { %1139 = vmatprep.subr.mxu0 %v538_v60 }
 0x48e   :  { %1140 = vmatpush3.msra.mxu0 %v538_v60  ;;  %v532_v62 = vpop.permute.xlu1 %531  ;;  %v865_v60 = vld [vmem:[%s1689_s10 + $0x8] sm:$0xff] }
 0x48f   :  { %1141 = vmatprep.subr.mxu0 %v536_v59 }
 0x490   :  { %1142 = vmatpush3.msra.mxu0 %v536_v59  ;;  %v534_v61 = vpop.permute.xlu0 %533  ;;  %v866_v59 = vld [vmem:[%s1689_s10 + $0x10] sm:$0xff] }
 0x491   :  { %1143 = vmatprep.subr.mxu0 %v534_v61 }
 0x492   :  { %1144 = vmatpush3.msra.mxu0 %v534_v61  ;;  %v864_v61 = vld [vmem:[%s1689_s10] sm:$0xff]  ;;  %s1264_s10 = scalar_lea.vmem %s982_s4, 256 }
 0x493   :  { %1145 = vmatprep.subr.mxu0 %v532_v62  ;;  %p1265_p10 = scmp.ne.s32.totalorder %s982_s4, %s1264_s10  ;;  %p1270_p12 = scmp.lt.s32.totalorder %s1264_s10, %s1264_s10 }
 0x494   :  { %1146 = vmatpush3.msra.mxu0 %v532_v62  ;;  %v1018_v62 = vld [vmem:[%s1688_s9] ss:$0 sm:$0xff] }
 0x495   :  { %1161 = vmatprep.subr.mxu0 %v773_v34  ;;  %p1271_p13 = por %p1270_p12, %p1269_p11 }
 0x497   :  { %p1272_p0 = pnand %p1271_p13, %p1265_p10 }
 0x4df   :  { %v1130_v63 = vpop.f32.mrf.mxu0 }
 0x4e0   :  { %v516_v2 = vmax.f32 %v1130_v63, 1e-30 }
 0x4e1   :  { %v506_v3 = vpop.f32.mrf.mxu0 }
 0x4e2   :  { %1212 = vrcp.f32 %v516_v2  ;;  %v515_v4 = vmax.f32 %v506_v3, 1e-30 }
 0x4e4   :  { %1214 = vrcp.f32 %v515_v4 }
 0x4ef   :  { %v1213_v5 = vpop.eup %1212 }
 0x4f0   :  { %v520_v6 = vmul.f32 %v1213_v5, %v1211_v53 }
 0x4f1   :  { %v1215_v7 = vpop.eup %1214 }
 0x4f2   :  { %v519_v8 = vmul.f32 %v1215_v7, %v1209_v52  ;;  %522 = vst.msk [vmem:[#allocation8 + $0x8] sm:$0xff] %vm413_vm5, %v520_v6 }
 0x4f4   :  { %1147 = vmatprep.mubr.msk.f32.mxu0 %vm413_vm5, %v519_v8  ;;  %521 = vst.msk [vmem:[#allocation8] sm:$0xff] %vm413_vm5, %v519_v8 }
 0x4f5   :  { %1148 = vmatmul.mubr.msk.f32.vlgmr.msra.gmra.mxu0 %vm413_vm5, %v520_v6 }
 0x4f6   :  { %1162 = vmatpush3.msra.mxu0 %v773_v34 }
 0x4f7   :  { %1163 = vmatprep.subr.mxu0 %v772_v20 }
 0x4f8   :  { %1164 = vmatpush3.msra.mxu0 %v772_v20 }
 0x4f9   :  { %1165 = vmatprep.subr.mxu0 %v771_v35 }
 0x4fa   :  { %1166 = vmatpush3.msra.mxu0 %v771_v35 }
 0x4fb   :  { %1167 = vmatprep.subr.mxu0 %v770_v36 }
 0x4fc   :  { %1168 = vmatpush3.msra.mxu0 %v770_v36 }
 0x5b5   :  { %v1149_v11 = vpop.f32.mrf.mxu0 }
 0x5b7   :  { %v627_v12 = vpop.f32.mrf.mxu0 }
 0x5b8   :  { %1158 = vmatprep.mubr.msk.f32.mxu1 %vm75_vm0, %v627_v12 }
 0x5b9   :  { %1159 = vmatmul.mubr.msk.f32.vlgmr.msra.gmra.mxu1 %vm75_vm0, %v1149_v11 }
 0x5ba   :  { %1173 = vmatpush3.msra.mxu1 %v871_v37 }
 0x5bb   :  { %1174 = vmatprep.subr.mxu1 %v870_v38 }
 0x5bc   :  { %1175 = vmatpush3.msra.mxu1 %v870_v38 }
 0x5bd   :  { %1176 = vmatprep.subr.mxu1 %v869_v39 }
 0x5be   :  { %1177 = vmatpush3.msra.mxu1 %v869_v39 }
 0x5bf   :  { %1178 = vmatprep.subr.mxu1 %v868_v40 }
 0x5c0   :  { %1179 = vmatpush3.msra.mxu1 %v868_v40 }
 0x5c1   :  { %1180 = vmatprep.subr.mxu1 %v867_v58 }
 0x5c2   :  { %1181 = vmatpush3.msra.mxu1 %v867_v58 }
 0x5c3   :  { %1182 = vmatprep.subr.mxu1 %v866_v59 }
 0x5c4   :  { %1183 = vmatpush3.msra.mxu1 %v866_v59 }
 0x5c5   :  { %1184 = vmatprep.subr.mxu1 %v865_v60 }
 0x5c6   :  { %1185 = vmatpush3.msra.mxu1 %v865_v60 }
 0x5c7   :  { %1186 = vmatprep.subr.mxu1 %v864_v61 }
 0x5c8   :  { %1187 = vmatpush3.msra.mxu1 %v864_v61 }
 0x679   :  { %v1160_v14 = vpop.f32.mrf.mxu1 }
 0x67a   :  { %v725_v15 = vadd.f32 %v1160_v14, %v1015_v13 }
 0x67b   :  { %v719_v16 = vpop.f32.mrf.mxu1 }
 0x67c   :  { %v1604_v17 = vadd.f32 %v725_v15, %v1405_v1  ;;  %v720_v26 = vadd.f32 %v1015_v13, %v719_v16 }
 0x67e   :  { %v1607_v27 = vadd.f32 %v720_v26, %v1403_v0  ;;  %v733_v28 = vsel %vm75_vm0, %v1604_v17, 0.0 }
 0x67f   :  { %734 = vadd.xlane.f32.xlu1 %v733_v28 }
 0x680   :  { %v730_v29 = vsel %vm75_vm0, %v1607_v27, 0.0 }
 0x681   :  { %731 = vadd.xlane.f32.xlu0 %v730_v29 }
 0x708   :  { %v735_v30 = vpop.xlane.xlu1 %734 }
 0x709   :  { %v737_v31 = vmul.f32 0.03125, %v735_v30 }
 0x70a   :  { %v732_v32 = vpop.xlane.xlu0 %731 }
 0x70b   :  { %v736_v18 = vmul.f32 0.03125, %v732_v32  ;;  %v739_v33 = vsub.f32 %v1604_v17, %v737_v31 }
 0x70d   :  { %v738_v1 = vsub.f32 %v1607_v27, %v736_v18  ;;  %v741_v19 = vmul.f32 %v739_v33, %v739_v33 }
 0x70f   :  { %v740_v22 = vmul.f32 %v738_v1, %v738_v1  ;;  %v745_v24 = vsel %vm75_vm0, %v741_v19, 0.0 }
 0x711   :  { %v742_v0 = vsel %vm75_vm0, %v740_v22, 0.0 }
 0x712   :  { %743 = vadd.xlane.f32.xlu0 %v742_v0 }
 0x716   :  { %746 = vadd.xlane.f32.xlu0 %v745_v24 }
 0x79b   :  { %v744_v25 = vpop.xlane.xlu0 %743 }
 0x79c   :  { %v748_v21 = vmul.f32 0.032258064, %v744_v25 }
 0x79e   :  { %1216 = vrsqrt.f32 %v748_v21  ;;  %vm752_vm6 = vcmp.eq.f32.partialorder %v748_v21, inf  ;;  %v755_v44 = vand.u32 2147483648, %v748_v21  ;;  %vm754_vm7 = vcmp.eq.f32.partialorder %v748_v21, 0.0 }
 0x79f   :  { %v747_v41 = vpop.xlane.xlu0 %746 }
 0x7a0   :  { %v749_v23 = vmul.f32 0.032258064, %v747_v41 }
 0x7a2   :  { %1218 = vrsqrt.f32 %v749_v23  ;;  %vm759_vm8 = vcmp.eq.f32.partialorder %v749_v23, inf  ;;  %v762_v50 = vand.u32 2147483648, %v749_v23  ;;  %vm761_vm9 = vcmp.eq.f32.partialorder %v749_v23, 0.0 }
 0x7ab   :  { %v1217_v42 = vpop.eup %1216 }
 0x7ac   :  { %v751_v43 = vmul.f32 %v1217_v42, %v748_v21 }
 0x7ae   :  { %v753_v45 = vsel %vm752_vm6, %v748_v21, %v751_v43 }
 0x7af   :  { %v1219_v46 = vpop.eup %1218  ;;  %v756_v47 = vsel %vm754_vm7, %v755_v44, %v753_v45 }
 0x7b0   :  { %v764_v48 = vadd.f32 1e-06, %v756_v47  ;;  %v758_v49 = vmul.f32 %v1219_v46, %v749_v23 }
 0x7b2   :  { %v760_v52 = vsel %vm759_vm8, %v749_v23, %v758_v49  ;;  %1220 = vrcp.f32 %v764_v48 }
 0x7b3   :  { %v763_v53 = vsel %vm761_vm9, %v762_v50, %v760_v52 }
 0x7b4   :  { %v765_v55 = vadd.f32 1e-06, %v763_v53 }
 0x7b6   :  { %1222 = vrcp.f32 %v765_v55 }
 0x7bf   :  { %v1221_v54 = vpop.eup %1220 }
 0x7c0   :  { %v768_v51 = vmul.f32 %v1221_v54, %v738_v1 }
 0x7c2   :  { %1169 = vmatprep.mubr.msk.f32.mxu0 %vm75_vm0, %v768_v51 }
 0x7c3   :  { %v1223_v56 = vpop.eup %1222 }
 0x7c4   :  { %v769_v57 = vmul.f32 %v1223_v56, %v739_v33 }
 0x7c6   :  { %1170 = vmatmul.mubr.msk.f32.vlgmr.msra.gmra.mxu0 %vm75_vm0, %v769_v57 }
 0x886   :  { %v1171_v63 = vpop.f32.mrf.mxu0 }
 0x887   :  { %v859_v2 = vadd.f32 %v1171_v63, %v1018_v62 }
 0x888   :  { %v853_v3 = vpop.f32.mrf.mxu0 }
 0x889   :  { %v854_v4 = vadd.f32 %v1018_v62, %v853_v3  ;;  %v863_v6 = vmax.f32 %v859_v2, 0.0 }
 0x88b   :  { %v862_v5 = vmax.f32 %v854_v4, 0.0 }
 0x88d   :  { %1188 = vmatprep.mubr.msk.f32.mxu1 %vm413_vm5, %v862_v5 }
 0x88e   :  { %1189 = vmatmul.mubr.msk.f32.vlgmr.msra.gmra.mxu1 %vm413_vm5, %v863_v6 }
 0x88f   :  { %1275 = shalt.err (!%p1272_p0)
}
 0x890   :  { %987 = dma.vmem_to_hbm [thread:$0]  %s982_s4, 256, %s1692_s13, [#allocation9], %s1313_s28, %s1313_s28, %s1314_s29  }
 0x891   :  { %v1021_v7 = vld [vmem:[%s1690_s11] ss:$0 sm:$0xff]  ;;  %s1320_s1 = smov [#allocation7]  }
 0x892   :  { %s969_s20 = sshll.u32 %s1320_s1, 4  ;;  %s970_s20 = int_to_ptr.vmem [resolvable:$true] %s969_s20 }
 0x893   :  { %s1284_s13 = scalar_lea.vmem %s970_s20, 256  ;;  %p1289_p2 = scmp.lt.s32.totalorder %s970_s20, %s970_s20 }
 0x894   :  { %p1285_p1 = scmp.ne.s32.totalorder %s970_s20, %s1284_s13  ;;  %p1290_p3 = scmp.lt.s32.totalorder %s1284_s13, %s1284_s13 }
 0x896   :  { %p1291_p4 = por %p1290_p3, %p1289_p2 }
 0x898   :  { %p1292_p5 = pnand %p1291_p4, %p1285_p1 }
 0x94e   :  { %v1190_v8 = vpop.f32.mrf.mxu1 }
 0x94f   :  { %v957_v9 = vadd.f32 %v1190_v8, %v1021_v7 }
 0x950   :  { %v951_v10 = vpop.f32.mrf.mxu1 }
 0x951   :  { %v961_v11 = vadd.f32 %v957_v9, %v1604_v17  ;;  %v952_v12 = vadd.f32 %v1021_v7, %v951_v10 }
 0x953   :  { %963 = vst.msk [vmem:[#allocation7 + $0x8] sm:$0xff] %vm75_vm0, %v961_v11  ;;  %v960_v13 = vadd.f32 %v952_v12, %v1607_v27 }
 0x955   :  { %962 = vst.msk [vmem:[#allocation7] sm:$0xff] %vm75_vm0, %v960_v13 }
 0x956   :  { %1295 = shalt.err (!%p1292_p5)
}
 0x957   :  { %975 = dma.vmem_to_hbm [thread:$0]  %s970_s20, 256, %s1691_s12, [#allocation4], %s1313_s28, %s1313_s28, %s1314_s29  }
 0x958   :  { %1308 = dma.done.wait [#allocation4], 256  }
 0x959   :  { %1309 = vsyncadd [#allocation4], 4294967040 }
 0x95a   :  { %1310 = dma.done.wait [#allocation9], 256  }
 0x95b   :  { %1311 = vsyncadd [#allocation9], 4294967040 }
 0x95c   :  { %994 = vsyncpa [#allocation3], 1 }
 0x95d   :  { %995 = vsyncpa [#allocation6], 1 }
 0x95e   :  { %996 = vsyncpa [#allocation4], 1 }
 0x95f   :  { %997 = vsyncpa [#allocation9], 1 }

</bundles_post_ra>
